<compile_context>
chip_gen: v6e
topology: v6e:2x2x1
jax: 0.10.0
libtpu: 0.0.40
codegen_flags: <defaults>
</compile_context>

<pallas_src>
import functools
import math

import numpy as np
import jax
import jax.numpy as jnp
from jax.experimental import pallas as pl
from jax.experimental.pallas import tpu as pltpu


# ---------------------------------------------------------------------------
# torch _Conv2dSamePadding padding rule (identical formula to the PyTorch code)
# ---------------------------------------------------------------------------
def _same_pad_1d(size, k, stride):
    p = max((size // stride - 1) * stride + (k - 1) + 1 - size, 0)
    return p // 2, p - p // 2


# ---------------------------------------------------------------------------
# Wrapper-side conv1 im2col, emitted in a conv2-friendly "phase plane" order.
#
# conv1 output pixels are emitted as 8 planes indexed by
#     (a, b, qw) = (row parity, col parity, column block shift)
# and inside each plane rows run over (r, j, n) with
#     pixel(row) = (2*r + a, 2*(j + qw) + b),  r in [0, OH2+1), j in [0, OW2).
# conv2's tap (dh, dw) -- a = dh%2, qh = dh//2, b = dw%2, qw = dw//2 -- then
# reads the CONTIGUOUS rows
#     [(plane*(OH2+1) + qh) * OW2 * N,  ... + OH2*OW2*N)
# of conv1's output, and every tap shares the same inner (i2, j2, n) ordering.
# Positions outside conv1's real 8x8 output (= conv2's zero padding) are
# "phantom" rows: their patches are zero and a mask removes the conv1 bias.
# ---------------------------------------------------------------------------
def _conv1_phase_patches(x_nchw, *, kh1, kw1, pad_h, pad_w, oh1, ow1, oh2, ow2):
    n = x_nchw.shape[0]
    x = jnp.transpose(x_nchw, (0, 2, 3, 1))                       # NCHW -> NHWC
    xp = jnp.pad(x, ((0, 0), pad_h, pad_w, (0, 0)))                # torch 'same' pad
    # standard kh1 x kw1 / stride-2 im2col over the real (oh1, ow1) grid;
    # feature order (dh, dw, cin) matches w1.reshape(kh1*kw1*cin, cout)
    cols = []
    for dh in range(kh1):
        for dw in range(kw1):
            cols.append(xp[:, dh:dh + 2 * oh1:2, dw:dw + 2 * ow1:2, :])
    p_std = jnp.concatenate(cols, axis=-1)                         # (N, oh1, ow1, K1)
    # two zero rows/cols of *pixels* so phantom (conv2 padding) positions read 0
    p_pad = jnp.pad(p_std, ((0, 0), (0, 2), (0, 2), (0, 0)))
    planes = []
    for a in range(2):
        for b in range(2):
            for qw in range(2):
                planes.append(
                    p_pad[:, a:a + 2 * oh2 + 1:2,
                          2 * qw + b:2 * qw + b + 2 * ow2 - 1:2, :])
    q = jnp.stack(planes, axis=0)                                  # (8, N, R, J, K1)
    q = jnp.transpose(q, (0, 2, 3, 1, 4))                          # (8, R, J, N, K1)
    # bf16 pre-cast in the wrapper: halves the HBM->VMEM DMA, no in-kernel casts
    return q.reshape(-1, q.shape[-1]).astype(jnp.bfloat16)


def _phantom_mask(n, oh1, ow1, oh2, ow2):
    """1.0 for real conv1 output pixels, 0.0 for phantom (conv2 padding) rows."""
    m = np.zeros((8, oh2 + 1, ow2, n, 1), np.float32)
    for p_idx in range(8):
        a, b, qw = p_idx // 4, (p_idx // 2) % 2, p_idx % 2
        for r in range(oh2 + 1):
            for j in range(ow2):
                if (2 * r + a) < oh1 and (2 * (j + qw) + b) < ow1:
                    m[p_idx, r, j] = 1.0
    return jnp.asarray(m.reshape(-1, 1))


def _conv2_slab_starts(n, oh2, ow2):
    """Static start row (in conv1's phase-ordered output) of each 3x3 tap slab."""
    starts = []
    for dh in range(3):
        for dw in range(3):
            a, qh = dh % 2, dh // 2
            b, qw = dw % 2, dw // 2
            p_idx = (a * 2 + b) * 2 + qw
            starts.append((p_idx * (oh2 + 1) + qh) * ow2 * n)
    return tuple(starts)


# ---------------------------------------------------------------------------
# The single fused Pallas kernel
# ---------------------------------------------------------------------------
def _fused_forward_kernel(p1_ref, mask_ref, w1_ref, b1_ref, w2_ref, b2_ref,
                          f1w_ref, f1b_ref, f2w_ref, f2b_ref, o_ref, flat_s,
                          *, slab_starts, batch, n_pix2, cout2):
    # ---- conv1: one MXU dot over all phase-plane rows (batch folded into M)
    h1 = jnp.dot(p1_ref[...], w1_ref[...], preferred_element_type=jnp.float32)
    h1 = (h1 + b1_ref[...]) * mask_ref[...]        # f32 bias; zero phantom rows
    h1 = h1.astype(jnp.bfloat16)

    # ---- conv2: 9 contiguous tap slabs concatenated along K -> ONE dot (K=288)
    rows2 = n_pix2 * batch                          # rows ordered (i2, j2, n)
    patches2 = jnp.concatenate(
        [h1[s:s + rows2, :] for s in slab_starts], axis=1)
    h2 = jnp.dot(patches2, w2_ref[...], preferred_element_type=jnp.float32)
    h2 = jnp.maximum(h2 + b2_ref[...], 0.0)         # fused bias + ReLU
    h2 = h2.astype(jnp.bfloat16)

    # ---- flatten: (pixel, n, cout) rows -> per-sample feature rows via a VMEM
    #      scratch (static lane-offset stores; fc1 weight rows were permuted at
    #      prep time to match torch's NCHW flatten semantics)
    for q in range(n_pix2):
        flat_s[:, q * cout2:(q + 1) * cout2] = h2[q * batch:(q + 1) * batch, :]

    # ---- fc1 (+bias), fc2 as VPU multiply + lane reduction (+bias), sigmoid
    h3 = jnp.dot(flat_s[...], f1w_ref[...],
                 preferred_element_type=jnp.float32) + f1b_ref[...]
    z = jnp.sum(h3 * f2w_ref[...], axis=-1, keepdims=True) + f2b_ref[...]
    o_ref[...] = 1.0 / (1.0 + jnp.exp(-z))          # exp goes to the EUP slot


# ---------------------------------------------------------------------------
# _AdaptiveNoiseMultiplier forward
# ---------------------------------------------------------------------------
def adaptive_noise_multiplier_forward(kp, x_nchw):
    """x_nchw: (N, C, H, W) like the PyTorch module.  Returns (N, 1)."""
    n, _, hh, ww = x_nchw.shape
    # The phase-plane layout assumes both stride-2 convs divide the spatial
    # dims evenly (true for the module's 16x16 default); fail loudly otherwise.
    assert hh % 4 == 0 and ww % 4 == 0 and hh >= 8 and ww >= 8
    oh1, ow1 = hh // 2, ww // 2
    oh2, ow2 = oh1 // 2, ow1 // 2
    kh1 = kw1 = 5
    pad_h = _same_pad_1d(hh, kh1, 2)
    pad_w = _same_pad_1d(ww, kw1, 2)
    assert _same_pad_1d(oh1, 3, 2) == (0, 1) and _same_pad_1d(ow1, 3, 2) == (0, 1)

    patches1 = _conv1_phase_patches(
        x_nchw, kh1=kh1, kw1=kw1, pad_h=pad_h, pad_w=pad_w,
        oh1=oh1, ow1=ow1, oh2=oh2, ow2=ow2)
    mask = _phantom_mask(n, oh1, ow1, oh2, ow2)
    slab_starts = _conv2_slab_starts(n, oh2, ow2)

    cout2 = kp["c2_w"].shape[-1]
    n_pix2 = oh2 * ow2
    kernel = functools.partial(
        _fused_forward_kernel, slab_starts=slab_starts,
        batch=n, n_pix2=n_pix2, cout2=cout2)

    # Single invocation, no grid: every operand (< 1 MiB total) lives whole in
    # VMEM, so there is no pipelining to configure and no per-step overhead.
    return pl.pallas_call(
        kernel,
        out_shape=jax.ShapeDtypeStruct((n, kp["fc2_b"].shape[-1]), jnp.float32),
        scratch_shapes=[pltpu.VMEM((n, n_pix2 * cout2), jnp.bfloat16)],
    )(patches1, mask, kp["c1_w"], kp["c1_b"], kp["c2_w"], kp["c2_b"],
      kp["fc1_w"], kp["fc1_b"], kp["fc2_w"], kp["fc2_b"])


# ---------------------------------------------------------------------------
# Parameters (synthetic, torch-default-style init) and one-time kernel prep
# ---------------------------------------------------------------------------
def init_params(key, *, noise_dim=(3, 16, 16), noise_channels=1, channels=32):
    cin, hh, ww = noise_dim
    c2 = channels * 2
    fc_in = c2 * (hh * ww) // 4 ** 2
    fc_mid = channels * 4
    ks = list(jax.random.split(key, 8))

    def u(k, shape, fan_in):                          # ~torch kaiming_uniform(a=sqrt(5))
        bound = 1.0 / math.sqrt(fan_in)
        return jax.random.uniform(k, shape, jnp.float32, -bound, bound)

    return {
        # conv weights stored HWIO (same values as torch OIHW, other layout)
        "c1_w": u(ks[0], (5, 5, cin, channels), cin * 25),
        "c1_b": u(ks[1], (channels,), cin * 25),
        "c2_w": u(ks[2], (3, 3, channels, c2), channels * 9),
        "c2_b": u(ks[3], (c2,), channels * 9),
        # fc weights stored (in, out); fc1 rows follow torch's NCHW flatten order
        "fc1_w": u(ks[4], (fc_in, fc_mid), fc_in),
        "fc1_b": u(ks[5], (fc_mid,), fc_in),
        "fc2_w": u(ks[6], (fc_mid, noise_channels), fc_mid),
        "fc2_b": u(ks[7], (noise_channels,), fc_mid),
    }


def prepare_params(p, *, conv_out_hw):
    """Host/trace-time reshuffle: flat bf16 conv weights (K = KH*KW*Cin rows in
    (dh, dw, cin) order), f32 2-D biases, fc1 rows permuted from torch's
    NCHW-flatten order to the kernel's (pixel, channel) order, fc2 as a f32
    row vector for the in-kernel VPU reduction."""
    oh2, ow2 = conv_out_hw
    kp = {}
    kh1, kw1, cin, ch = p["c1_w"].shape
    kp["c1_w"] = p["c1_w"].reshape(kh1 * kw1 * cin, ch).astype(jnp.bfloat16)
    kp["c1_b"] = p["c1_b"].reshape(1, -1).astype(jnp.float32)
    kh2, kw2, _, c2 = p["c2_w"].shape
    kp["c2_w"] = p["c2_w"].reshape(kh2 * kw2 * ch, c2).astype(jnp.bfloat16)
    kp["c2_b"] = p["c2_b"].reshape(1, -1).astype(jnp.float32)
    f_mid = p["fc1_w"].shape[-1]
    w1 = p["fc1_w"].reshape(c2, oh2 * ow2, f_mid).transpose(1, 0, 2)
    kp["fc1_w"] = w1.reshape(oh2 * ow2 * c2, f_mid).astype(jnp.bfloat16)
    kp["fc1_b"] = p["fc1_b"].reshape(1, -1).astype(jnp.float32)
    nc = p["fc2_w"].shape[-1]
    # TODO(synk): noise_channels > 1 would use a small MXU dot for fc2 instead
    # of the VPU multiply + lane reduction used here (module default is 1).
    assert nc == 1
    kp["fc2_w"] = p["fc2_w"].reshape(1, -1).astype(jnp.float32)    # (1, 128)
    kp["fc2_b"] = p["fc2_b"].reshape(1, -1).astype(jnp.float32)
    return kp


# ---------------------------------------------------------------------------
# Pure-JAX reference (mirrors the PyTorch module; matmul operands in bf16 to
# match the kernel's deliberate MXU precision policy, biases / fc2 in f32)
# ---------------------------------------------------------------------------
def reference_forward(p, x_nchw):
    bf16, f32 = jnp.bfloat16, jnp.float32
    x = jnp.transpose(x_nchw, (0, 2, 3, 1))

    def conv(x, w, b, stride):
        ph = _same_pad_1d(x.shape[1], w.shape[0], stride)
        pw = _same_pad_1d(x.shape[2], w.shape[1], stride)
        y = jax.lax.conv_general_dilated(
            x.astype(bf16), w.astype(bf16), (stride, stride), (ph, pw),
            dimension_numbers=("NHWC", "HWIO", "NHWC"),
            preferred_element_type=f32)
        return y + b

    h = conv(x, p["c1_w"], p["c1_b"], 2)
    h = jnp.maximum(conv(h, p["c2_w"], p["c2_b"], 2), 0.0)
    flat = jnp.transpose(h, (0, 3, 1, 2)).reshape(h.shape[0], -1)   # NCHW flatten
    h = jnp.dot(flat.astype(bf16), p["fc1_w"].astype(bf16),
                preferred_element_type=f32) + p["fc1_b"]
    z = jnp.dot(h, p["fc2_w"].astype(f32)) + p["fc2_b"]             # fc2 in f32
    return 1.0 / (1.0 + jnp.exp(-z))


# ---------------------------------------------------------------------------
if __name__ == "__main__":
    noise_dim = (3, 16, 16)                           # (C, H, W), as in PyTorch
    channels = 32
    noise_channels = 1
    batch = 2

    root = jax.random.PRNGKey(0)
    k_param, k_x = jax.random.split(root)
    params = init_params(k_param, noise_dim=noise_dim,
                         noise_channels=noise_channels, channels=channels)
    kparams = prepare_params(
        params, conv_out_hw=(noise_dim[1] // 4, noise_dim[2] // 4))

    x = jax.random.normal(k_x, (batch,) + noise_dim, jnp.float32)   # NCHW

    fwd = jax.jit(adaptive_noise_multiplier_forward)
    out = fwd(kparams, x)
    jax.block_until_ready(out)

    ref = reference_forward(params, x)
    assert out.shape == (batch, noise_channels), out.shape
    assert bool(jnp.all(jnp.isfinite(out)))
    err = float(jnp.max(jnp.abs(out - ref)))
    assert err < 2e-3, f"max |pallas - reference| = {err}"
    print("KERNEL_OK")
</pallas_src>

<mosaic_0001>
module attributes {stable_mosaic.version = 11 : i64} {
  func.func @_fused_forward_kernel(%arg0: memref<320x75xbf16, #tpu.memory_space<vmem>>, %arg1: memref<320x1xf32, #tpu.memory_space<vmem>>, %arg2: memref<75x32xbf16, #tpu.memory_space<vmem>>, %arg3: memref<1x32xf32, #tpu.memory_space<vmem>>, %arg4: memref<288x64xbf16, #tpu.memory_space<vmem>>, %arg5: memref<1x64xf32, #tpu.memory_space<vmem>>, %arg6: memref<1024x128xbf16, #tpu.memory_space<vmem>>, %arg7: memref<1x128xf32, #tpu.memory_space<vmem>>, %arg8: memref<1x128xf32, #tpu.memory_space<vmem>>, %arg9: memref<1x1xf32, #tpu.memory_space<vmem>>, %arg10: memref<2x1xf32, #tpu.memory_space<vmem>>, %arg11: memref<2x1024xbf16, #tpu.memory_space<vmem>>) attributes {dimension_semantics = [], scalar_prefetch = 0 : i64, scratch_operands = 1 : i64, tpu.core_type = #tpu.core_type<tc>} {
    %c0 = arith.constant 0 : index
    %c0_0 = arith.constant 0 : index
    %0 = vector.load %arg0[%c0, %c0_0] : memref<320x75xbf16, #tpu.memory_space<vmem>>, vector<320x75xbf16>
    %c0_1 = arith.constant 0 : index
    %c0_2 = arith.constant 0 : index
    %1 = vector.load %arg2[%c0_1, %c0_2] : memref<75x32xbf16, #tpu.memory_space<vmem>>, vector<75x32xbf16>
    %cst = arith.constant dense<0.000000e+00> : vector<320x32xf32>
    %2 = tpu.matmul %0, %1, %cst {dimension_numbers = #tpu.dot_dimension_numbers<[1], [0], [0], [1], [0, 0, 1, 1], [], []>} : vector<320x75xbf16>, vector<75x32xbf16>, vector<320x32xf32> -> vector<320x32xf32>
    %c0_3 = arith.constant 0 : index
    %c0_4 = arith.constant 0 : index
    %3 = vector.load %arg3[%c0_3, %c0_4] : memref<1x32xf32, #tpu.memory_space<vmem>>, vector<1x32xf32>
    %4 = vector.broadcast %3 : vector<1x32xf32> to vector<320x32xf32>
    %5 = arith.addf %2, %4 : vector<320x32xf32>
    %c0_5 = arith.constant 0 : index
    %c0_6 = arith.constant 0 : index
    %6 = vector.load %arg1[%c0_5, %c0_6] : memref<320x1xf32, #tpu.memory_space<vmem>>, vector<320x1xf32>
    %7 = vector.broadcast %6 : vector<320x1xf32> to vector<320x32xf32>
    %8 = arith.mulf %5, %7 : vector<320x32xf32>
    %9 = arith.truncf %8 : vector<320x32xf32> to vector<320x32xbf16>
    %10 = vector.extract_strided_slice %9 {offsets = [0, 0], sizes = [32, 32], strides = [1, 1]} : vector<320x32xbf16> to vector<32x32xbf16>
    %11 = vector.extract_strided_slice %9 {offsets = [80, 0], sizes = [32, 32], strides = [1, 1]} : vector<320x32xbf16> to vector<32x32xbf16>
    %12 = vector.extract_strided_slice %9 {offsets = [40, 0], sizes = [32, 32], strides = [1, 1]} : vector<320x32xbf16> to vector<32x32xbf16>
    %13 = vector.extract_strided_slice %9 {offsets = [160, 0], sizes = [32, 32], strides = [1, 1]} : vector<320x32xbf16> to vector<32x32xbf16>
    %14 = vector.extract_strided_slice %9 {offsets = [240, 0], sizes = [32, 32], strides = [1, 1]} : vector<320x32xbf16> to vector<32x32xbf16>
    %15 = vector.extract_strided_slice %9 {offsets = [200, 0], sizes = [32, 32], strides = [1, 1]} : vector<320x32xbf16> to vector<32x32xbf16>
    %16 = vector.extract_strided_slice %9 {offsets = [8, 0], sizes = [32, 32], strides = [1, 1]} : vector<320x32xbf16> to vector<32x32xbf16>
    %17 = vector.extract_strided_slice %9 {offsets = [88, 0], sizes = [32, 32], strides = [1, 1]} : vector<320x32xbf16> to vector<32x32xbf16>
    %18 = vector.extract_strided_slice %9 {offsets = [48, 0], sizes = [32, 32], strides = [1, 1]} : vector<320x32xbf16> to vector<32x32xbf16>
    %19 = tpu.concatenate %10, %11, %12, %13, %14, %15, %16, %17, %18 in 1 : vector<32x32xbf16>, vector<32x32xbf16>, vector<32x32xbf16>, vector<32x32xbf16>, vector<32x32xbf16>, vector<32x32xbf16>, vector<32x32xbf16>, vector<32x32xbf16>, vector<32x32xbf16> -> vector<32x288xbf16>
    %c0_7 = arith.constant 0 : index
    %c0_8 = arith.constant 0 : index
    %20 = vector.load %arg4[%c0_7, %c0_8] : memref<288x64xbf16, #tpu.memory_space<vmem>>, vector<288x64xbf16>
    %cst_9 = arith.constant dense<0.000000e+00> : vector<32x64xf32>
    %21 = tpu.matmul %19, %20, %cst_9 {dimension_numbers = #tpu.dot_dimension_numbers<[1], [0], [0], [1], [0, 0, 1, 1], [], []>} : vector<32x288xbf16>, vector<288x64xbf16>, vector<32x64xf32> -> vector<32x64xf32>
    %c0_10 = arith.constant 0 : index
    %c0_11 = arith.constant 0 : index
    %22 = vector.load %arg5[%c0_10, %c0_11] : memref<1x64xf32, #tpu.memory_space<vmem>>, vector<1x64xf32>
    %23 = vector.broadcast %22 : vector<1x64xf32> to vector<32x64xf32>
    %24 = arith.addf %21, %23 : vector<32x64xf32>
    %cst_12 = arith.constant 0.000000e+00 : f32
    %25 = vector.broadcast %cst_12 : f32 to vector<32x64xf32>
    %26 = arith.maximumf %24, %25 : vector<32x64xf32>
    %27 = arith.truncf %26 : vector<32x64xf32> to vector<32x64xbf16>
    %28 = vector.extract_strided_slice %27 {offsets = [0, 0], sizes = [2, 64], strides = [1, 1]} : vector<32x64xbf16> to vector<2x64xbf16>
    %c0_13 = arith.constant 0 : index
    %c0_14 = arith.constant 0 : index
    %29 = vector.load %arg11[%c0_13, %c0_14] : memref<2x1024xbf16, #tpu.memory_space<vmem>>, vector<2x64xbf16>
    tpu.vector_store %arg11[%c0_13, %c0_14], %28 {strides = array<i32>} : memref<2x1024xbf16, #tpu.memory_space<vmem>>, vector<2x64xbf16>,
    %30 = vector.extract_strided_slice %27 {offsets = [2, 0], sizes = [2, 64], strides = [1, 1]} : vector<32x64xbf16> to vector<2x64xbf16>
    %c0_15 = arith.constant 0 : index
    %c64 = arith.constant 64 : index
    %31 = vector.load %arg11[%c0_15, %c64] : memref<2x1024xbf16, #tpu.memory_space<vmem>>, vector<2x64xbf16>
    tpu.vector_store %arg11[%c0_15, %c64], %30 {strides = array<i32>} : memref<2x1024xbf16, #tpu.memory_space<vmem>>, vector<2x64xbf16>,
    %32 = vector.extract_strided_slice %27 {offsets = [4, 0], sizes = [2, 64], strides = [1, 1]} : vector<32x64xbf16> to vector<2x64xbf16>
    %c0_16 = arith.constant 0 : index
    %c128 = arith.constant 128 : index
    %33 = vector.load %arg11[%c0_16, %c128] : memref<2x1024xbf16, #tpu.memory_space<vmem>>, vector<2x64xbf16>
    tpu.vector_store %arg11[%c0_16, %c128], %32 {strides = array<i32>} : memref<2x1024xbf16, #tpu.memory_space<vmem>>, vector<2x64xbf16>,
    %34 = vector.extract_strided_slice %27 {offsets = [6, 0], sizes = [2, 64], strides = [1, 1]} : vector<32x64xbf16> to vector<2x64xbf16>
    %c0_17 = arith.constant 0 : index
    %c192 = arith.constant 192 : index
    %35 = vector.load %arg11[%c0_17, %c192] : memref<2x1024xbf16, #tpu.memory_space<vmem>>, vector<2x64xbf16>
    tpu.vector_store %arg11[%c0_17, %c192], %34 {strides = array<i32>} : memref<2x1024xbf16, #tpu.memory_space<vmem>>, vector<2x64xbf16>,
    %36 = vector.extract_strided_slice %27 {offsets = [8, 0], sizes = [2, 64], strides = [1, 1]} : vector<32x64xbf16> to vector<2x64xbf16>
    %c0_18 = arith.constant 0 : index
    %c256 = arith.constant 256 : index
    %37 = vector.load %arg11[%c0_18, %c256] : memref<2x1024xbf16, #tpu.memory_space<vmem>>, vector<2x64xbf16>
    tpu.vector_store %arg11[%c0_18, %c256], %36 {strides = array<i32>} : memref<2x1024xbf16, #tpu.memory_space<vmem>>, vector<2x64xbf16>,
    %38 = vector.extract_strided_slice %27 {offsets = [10, 0], sizes = [2, 64], strides = [1, 1]} : vector<32x64xbf16> to vector<2x64xbf16>
    %c0_19 = arith.constant 0 : index
    %c320 = arith.constant 320 : index
    %39 = vector.load %arg11[%c0_19, %c320] : memref<2x1024xbf16, #tpu.memory_space<vmem>>, vector<2x64xbf16>
    tpu.vector_store %arg11[%c0_19, %c320], %38 {strides = array<i32>} : memref<2x1024xbf16, #tpu.memory_space<vmem>>, vector<2x64xbf16>,
    %40 = vector.extract_strided_slice %27 {offsets = [12, 0], sizes = [2, 64], strides = [1, 1]} : vector<32x64xbf16> to vector<2x64xbf16>
    %c0_20 = arith.constant 0 : index
    %c384 = arith.constant 384 : index
    %41 = vector.load %arg11[%c0_20, %c384] : memref<2x1024xbf16, #tpu.memory_space<vmem>>, vector<2x64xbf16>
    tpu.vector_store %arg11[%c0_20, %c384], %40 {strides = array<i32>} : memref<2x1024xbf16, #tpu.memory_space<vmem>>, vector<2x64xbf16>,
    %42 = vector.extract_strided_slice %27 {offsets = [14, 0], sizes = [2, 64], strides = [1, 1]} : vector<32x64xbf16> to vector<2x64xbf16>
    %c0_21 = arith.constant 0 : index
    %c448 = arith.constant 448 : index
    %43 = vector.load %arg11[%c0_21, %c448] : memref<2x1024xbf16, #tpu.memory_space<vmem>>, vector<2x64xbf16>
    tpu.vector_store %arg11[%c0_21, %c448], %42 {strides = array<i32>} : memref<2x1024xbf16, #tpu.memory_space<vmem>>, vector<2x64xbf16>,
    %44 = vector.extract_strided_slice %27 {offsets = [16, 0], sizes = [2, 64], strides = [1, 1]} : vector<32x64xbf16> to vector<2x64xbf16>
    %c0_22 = arith.constant 0 : index
    %c512 = arith.constant 512 : index
    %45 = vector.load %arg11[%c0_22, %c512] : memref<2x1024xbf16, #tpu.memory_space<vmem>>, vector<2x64xbf16>
    tpu.vector_store %arg11[%c0_22, %c512], %44 {strides = array<i32>} : memref<2x1024xbf16, #tpu.memory_space<vmem>>, vector<2x64xbf16>,
    %46 = vector.extract_strided_slice %27 {offsets = [18, 0], sizes = [2, 64], strides = [1, 1]} : vector<32x64xbf16> to vector<2x64xbf16>
    %c0_23 = arith.constant 0 : index
    %c576 = arith.constant 576 : index
    %47 = vector.load %arg11[%c0_23, %c576] : memref<2x1024xbf16, #tpu.memory_space<vmem>>, vector<2x64xbf16>
    tpu.vector_store %arg11[%c0_23, %c576], %46 {strides = array<i32>} : memref<2x1024xbf16, #tpu.memory_space<vmem>>, vector<2x64xbf16>,
    %48 = vector.extract_strided_slice %27 {offsets = [20, 0], sizes = [2, 64], strides = [1, 1]} : vector<32x64xbf16> to vector<2x64xbf16>
    %c0_24 = arith.constant 0 : index
    %c640 = arith.constant 640 : index
    %49 = vector.load %arg11[%c0_24, %c640] : memref<2x1024xbf16, #tpu.memory_space<vmem>>, vector<2x64xbf16>
    tpu.vector_store %arg11[%c0_24, %c640], %48 {strides = array<i32>} : memref<2x1024xbf16, #tpu.memory_space<vmem>>, vector<2x64xbf16>,
    %50 = vector.extract_strided_slice %27 {offsets = [22, 0], sizes = [2, 64], strides = [1, 1]} : vector<32x64xbf16> to vector<2x64xbf16>
    %c0_25 = arith.constant 0 : index
    %c704 = arith.constant 704 : index
    %51 = vector.load %arg11[%c0_25, %c704] : memref<2x1024xbf16, #tpu.memory_space<vmem>>, vector<2x64xbf16>
    tpu.vector_store %arg11[%c0_25, %c704], %50 {strides = array<i32>} : memref<2x1024xbf16, #tpu.memory_space<vmem>>, vector<2x64xbf16>,
    %52 = vector.extract_strided_slice %27 {offsets = [24, 0], sizes = [2, 64], strides = [1, 1]} : vector<32x64xbf16> to vector<2x64xbf16>
    %c0_26 = arith.constant 0 : index
    %c768 = arith.constant 768 : index
    %53 = vector.load %arg11[%c0_26, %c768] : memref<2x1024xbf16, #tpu.memory_space<vmem>>, vector<2x64xbf16>
    tpu.vector_store %arg11[%c0_26, %c768], %52 {strides = array<i32>} : memref<2x1024xbf16, #tpu.memory_space<vmem>>, vector<2x64xbf16>,
    %54 = vector.extract_strided_slice %27 {offsets = [26, 0], sizes = [2, 64], strides = [1, 1]} : vector<32x64xbf16> to vector<2x64xbf16>
    %c0_27 = arith.constant 0 : index
    %c832 = arith.constant 832 : index
    %55 = vector.load %arg11[%c0_27, %c832] : memref<2x1024xbf16, #tpu.memory_space<vmem>>, vector<2x64xbf16>
    tpu.vector_store %arg11[%c0_27, %c832], %54 {strides = array<i32>} : memref<2x1024xbf16, #tpu.memory_space<vmem>>, vector<2x64xbf16>,
    %56 = vector.extract_strided_slice %27 {offsets = [28, 0], sizes = [2, 64], strides = [1, 1]} : vector<32x64xbf16> to vector<2x64xbf16>
    %c0_28 = arith.constant 0 : index
    %c896 = arith.constant 896 : index
    %57 = vector.load %arg11[%c0_28, %c896] : memref<2x1024xbf16, #tpu.memory_space<vmem>>, vector<2x64xbf16>
    tpu.vector_store %arg11[%c0_28, %c896], %56 {strides = array<i32>} : memref<2x1024xbf16, #tpu.memory_space<vmem>>, vector<2x64xbf16>,
    %58 = vector.extract_strided_slice %27 {offsets = [30, 0], sizes = [2, 64], strides = [1, 1]} : vector<32x64xbf16> to vector<2x64xbf16>
    %c0_29 = arith.constant 0 : index
    %c960 = arith.constant 960 : index
    %59 = vector.load %arg11[%c0_29, %c960] : memref<2x1024xbf16, #tpu.memory_space<vmem>>, vector<2x64xbf16>
    tpu.vector_store %arg11[%c0_29, %c960], %58 {strides = array<i32>} : memref<2x1024xbf16, #tpu.memory_space<vmem>>, vector<2x64xbf16>,
    %c0_30 = arith.constant 0 : index
    %c0_31 = arith.constant 0 : index
    %60 = vector.load %arg11[%c0_30, %c0_31] : memref<2x1024xbf16, #tpu.memory_space<vmem>>, vector<2x1024xbf16>
    %c0_32 = arith.constant 0 : index
    %c0_33 = arith.constant 0 : index
    %61 = vector.load %arg6[%c0_32, %c0_33] : memref<1024x128xbf16, #tpu.memory_space<vmem>>, vector<1024x128xbf16>
    %cst_34 = arith.constant dense<0.000000e+00> : vector<2x128xf32>
    %62 = tpu.matmul %60, %61, %cst_34 {dimension_numbers = #tpu.dot_dimension_numbers<[1], [0], [0], [1], [0, 0, 1, 1], [], []>} : vector<2x1024xbf16>, vector<1024x128xbf16>, vector<2x128xf32> -> vector<2x128xf32>
    %c0_35 = arith.constant 0 : index
    %c0_36 = arith.constant 0 : index
    %63 = vector.load %arg7[%c0_35, %c0_36] : memref<1x128xf32, #tpu.memory_space<vmem>>, vector<1x128xf32>
    %64 = vector.broadcast %63 : vector<1x128xf32> to vector<2x128xf32>
    %65 = arith.addf %62, %64 : vector<2x128xf32>
    %c0_37 = arith.constant 0 : index
    %c0_38 = arith.constant 0 : index
    %66 = vector.load %arg8[%c0_37, %c0_38] : memref<1x128xf32, #tpu.memory_space<vmem>>, vector<1x128xf32>
    %67 = vector.broadcast %66 : vector<1x128xf32> to vector<2x128xf32>
    %68 = arith.mulf %65, %67 : vector<2x128xf32>
    %cst_39 = arith.constant dense<0.000000e+00> : vector<2xf32>
    %69 = vector.multi_reduction <add>, %68, %cst_39 [1] : vector<2x128xf32> to vector<2xf32>
    %70 = vector.shape_cast %69 : vector<2xf32> to vector<2x1xf32>
    %c0_40 = arith.constant 0 : index
    %c0_41 = arith.constant 0 : index
    %71 = vector.load %arg9[%c0_40, %c0_41] : memref<1x1xf32, #tpu.memory_space<vmem>>, vector<1x1xf32>
    %72 = vector.broadcast %71 : vector<1x1xf32> to vector<2x1xf32>
    %73 = arith.addf %70, %72 : vector<2x1xf32>
    %cst_42 = arith.constant 0.000000e+00 : f32
    %74 = vector.broadcast %cst_42 : f32 to vector<2x1xf32>
    %75 = arith.subf %74, %73 : vector<2x1xf32>
    %76 = math.exp %75 : vector<2x1xf32>
    %cst_43 = arith.constant 1.000000e+00 : f32
    %77 = vector.broadcast %cst_43 : f32 to vector<2x1xf32>
    %78 = arith.addf %77, %76 : vector<2x1xf32>
    %cst_44 = arith.constant 1.000000e+00 : f32
    %79 = vector.broadcast %cst_44 : f32 to vector<2x1xf32>
    %80 = arith.divf %79, %78 : vector<2x1xf32>
    %c0_45 = arith.constant 0 : index
    %c0_46 = arith.constant 0 : index
    %81 = vector.load %arg10[%c0_45, %c0_46] : memref<2x1xf32, #tpu.memory_space<vmem>>, vector<2x1xf32>
    tpu.vector_store %arg10[%c0_45, %c0_46], %80 {strides = array<i32>} : memref<2x1xf32, #tpu.memory_space<vmem>>, vector<2x1xf32>,
    return
  }
}

</mosaic_0001>

<bundles_post_ra>
// kernel: adaptive_noise_multiplier_forward.1
= control target key start
LH: loop header
LB: loop body
LE: loop exit
PB: predicated region body
PF: predicated region fallthrough
CT: control target
= control target key end

     0   :  { %vm285_vm0 = vcmask 1044480   ;;  %vm286_vm1 = vcmask 1045504   ;;  %v2430_v1 = vmov 65535   ;;  %vm224_vm2 = vcmask 613376   ;;  %s2433_s27 = smov 32   ;;  %s2434_s16 = smov 96   ;;  %s3127_s2 = inlined_call_operand.vmem [shape: bf16[75,32], index: 2, kind: input, shape index: {}]   ;;  %s3128_s0 = inlined_call_operand.vmem [shape: bf16[320,75], index: 0, kind: input, shape index: {}]   ;;  %s3129_s1 = inlined_call_operand.vmem [shape: f32[320,1], index: 1, kind: input, shape index: {}]   ;;  %s3130_s3 = inlined_call_operand.vmem [shape: f32[1,32], index: 3, kind: input, shape index: {}]   ;;  %s3131_s4 = inlined_call_operand.vmem [shape: bf16[288,64], index: 4, kind: input, shape index: {}]   ;;  %s3132_s6 = inlined_call_operand.vmem [shape: bf16[1024,128], index: 6, kind: input, shape index: {}]   ;;  %s3133_s5 = inlined_call_operand.vmem [shape: f32[1,64], index: 5, kind: input, shape index: {}]   ;;  %s3134_s9 = inlined_call_operand.<no memory space> [shape: f32[1,1], index: 9, kind: input, shape index: {}]   ;;  %s3135_s7 = inlined_call_operand.vmem [shape: f32[1,128], index: 7, kind: input, shape index: {}]   ;;  %s3136_s8 = inlined_call_operand.vmem [shape: f32[1,128], index: 8, kind: input, shape index: {}]   ;;  %s3137_s10 = inlined_call_operand.vmem [shape: f32[2,1], index: 10, kind: output, shape index: {}]  }
   0x1   :  { %v2318_v0 = vld [vmem:[%s3127_s2 + $0x20] sm:$0x3f]   ;;  %v287_v2 = vsel %vm285_vm0, 4294967295, %v2430_v1  ;;  %v2319_v5 = vld [vmem:[%s3127_s2 + $0x18] sm:$0xff]   ;;  %v2431_v6 = vmov 0   ;;  %v2320_v8 = vld [vmem:[%s3127_s2 + $0x10] sm:$0xff]  }
   0x2   :  { %v288_v3 = vsel %vm286_vm1, %v287_v2, 0  ;;  %2317 = vset.pattern.permute.xlu1 %v2431_v6  ;;  %2316 = vset.pattern.permute.xlu0 %v2431_v6  ;;  %v2323_v7 = vld [vmem:[%s3128_s0] sm:$0xff]   ;;  %v2321_v9 = vld [vmem:[%s3127_s2 + $0x8] sm:$0xff]   ;;  %v497_v11 = vld [vmem:[%s3129_s1 + $0xd0] sm:$0xff]  ;;  %vm709_vm3 = vcmask 1043456   ;;  %vm757_vm4 = vcmask 261120  }
   0x3   :  { %v290_v4 = vand.u32 %v2318_v0, %v288_v3  ;;  %2262 = vmatprep.mubr.msk.bf16.mxu0 %vm224_vm2, %v2323_v7  ;;  %v2322_v10 = vld [vmem:[%s3127_s2] sm:$0xff]   ;;  %617 = vperm.xlu1 %2317, %v497_v11   ;;  %v498_v13 = vld [vmem:[%s3129_s1 + $0xd8] sm:$0xff]  ;;  %v496_v14 = vld [vmem:[%s3129_s1 + $0xc8] sm:$0xff]  ;;  %vm764_vm5 = vcmask 523264   ;;  %vm769_vm6 = vcmask 785408   ;;  %vm1053_vm7 = vcmask 516096  }
   0x4   :  { %v495_v12 = vld [vmem:[%s3129_s1 + $0xc0] sm:$0xff]  ;;  %v2324_v15 = vld [vmem:[%s3128_s0 + $0x8] sm:$0xff]   ;;  %v2325_v18 = vld [vmem:[%s3128_s0 + $0x10] sm:$0xff]   ;;  %vm1081_vm8 = vcmask 1040896   ;;  %vm1947_vm9 = vcmask 1041408   ;;  %vm1965_vm10 = vcmask 1024  }
   0x5   :  { %2252 = vmatprep.subr.bf16.mxu0 %v290_v4  ;;  %607 = vperm.xlu0 %2316, %v495_v12   ;;  %v476_v16 = vld [vmem:[%s3129_s1 + $0x8] sm:$0xff]  ;;  %v475_v17 = vld [vmem:[%s3129_s1] sm:$0xff]  ;;  %v478_v19 = vld [vmem:[%s3129_s1 + $0x18] sm:$0xff] }
   0x6   :  { %2253 = vmatpush3.bf16.msra.mxu0 %v290_v4  ;;  %v477_v20 = vld [vmem:[%s3129_s1 + $0x10] sm:$0xff]  ;;  %v2326_v21 = vld [vmem:[%s3128_s0 + $0x18] sm:$0xff]   ;;  %v480_v22 = vld [vmem:[%s3129_s1 + $0x28] sm:$0xff] }
   0x7   :  { %2254 = vmatprep.subr.bf16.mxu0 %v2319_v5  ;;  %622 = vperm.xlu1 %2317, %v498_v13   ;;  %v479_v23 = vld [vmem:[%s3129_s1 + $0x20] sm:$0xff]  ;;  %v482_v25 = vld [vmem:[%s3129_s1 + $0x38] sm:$0xff]  ;;  %v481_v26 = vld [vmem:[%s3129_s1 + $0x30] sm:$0xff] }
   0x8   :  { %v2327_v24 = vld [vmem:[%s3128_s0 + $0x20] sm:$0xff]   ;;  %v2328_v27 = vld [vmem:[%s3128_s0 + $0x28] sm:$0xff]   ;;  %v486_v28 = vld [vmem:[%s3129_s1 + $0x58] sm:$0xff] }
   0x9   :  { %612 = vperm.xlu0 %2316, %v496_v14   ;;  %v485_v29 = vld [vmem:[%s3129_s1 + $0x50] sm:$0xff]  ;;  %v488_v31 = vld [vmem:[%s3129_s1 + $0x68] sm:$0xff]  ;;  %v487_v32 = vld [vmem:[%s3129_s1 + $0x60] sm:$0xff] }
   0xa   :  { %2255 = vmatpush3.bf16.msra.mxu0 %v2319_v5  ;;  %v2329_v30 = vld [vmem:[%s3128_s0 + $0x30] sm:$0xff]   ;;  %v2330_v33 = vld [vmem:[%s3128_s0 + $0x38] sm:$0xff]   ;;  %v492_v34 = vld [vmem:[%s3129_s1 + $0xa8] sm:$0xff] }
   0xb   :  { %2256 = vmatprep.subr.bf16.mxu0 %v2320_v8  ;;  %512 = vperm.xlu1 %2317, %v476_v16   ;;  %v491_v35 = vld [vmem:[%s3129_s1 + $0xa0] sm:$0xff]  ;;  %v500_v37 = vld [vmem:[%s3129_s1 + $0xe8] sm:$0xff]  ;;  %v2333_v42 = vld [vmem:[%s3128_s0 + $0x50] sm:$0xff]  }
   0xc   :  { %v2331_v36 = vld [vmem:[%s3128_s0 + $0x40] sm:$0xff]   ;;  %v2332_v39 = vld [vmem:[%s3128_s0 + $0x48] sm:$0xff]   ;;  %v490_v43 = vld [vmem:[%s3129_s1 + $0x78] sm:$0xff] }
   0xd   :  { %507 = vperm.xlu0 %2316, %v475_v17   ;;  %v499_v38 = vld [vmem:[%s3129_s1 + $0xe0] sm:$0xff]  ;;  %v484_v40 = vld [vmem:[%s3129_s1 + $0x48] sm:$0xff]  ;;  %v489_v44 = vld [vmem:[%s3129_s1 + $0x70] sm:$0xff] }
   0xe   :  { %2257 = vmatpush3.bf16.msra.mxu0 %v2320_v8  ;;  %v483_v41 = vld [vmem:[%s3129_s1 + $0x40] sm:$0xff]  ;;  %v2334_v45 = vld [vmem:[%s3128_s0 + $0x58] sm:$0xff]   ;;  %v493_v47 = vld [vmem:[%s3129_s1 + $0xb0] sm:$0xff] }
   0xf   :  { %2258 = vmatprep.subr.bf16.mxu0 %v2321_v9  ;;  %522 = vperm.xlu1 %2317, %v478_v19   ;;  %v494_v46 = vld [vmem:[%s3129_s1 + $0xb8] sm:$0xff]  ;;  %v2335_v48 = vld [vmem:[%s3128_s0 + $0x60] sm:$0xff]   ;;  %v501_v50 = vld [vmem:[%s3129_s1 + $0xf0] sm:$0xff] }
  0x10   :  { %v502_v49 = vld [vmem:[%s3129_s1 + $0xf8] sm:$0xff]  ;;  %v2336_v51 = vld [vmem:[%s3128_s0 + $0x68] sm:$0xff]   ;;  %v503_v53 = vld [vmem:[%s3129_s1 + $0x100] sm:$0xff] }
  0x11   :  { %517 = vperm.xlu0 %2316, %v477_v20   ;;  %v504_v52 = vld [vmem:[%s3129_s1 + $0x108] sm:$0xff]  ;;  %v2337_v54 = vld [vmem:[%s3128_s0 + $0x70] sm:$0xff]   ;;  %v2338_v55 = vld [vmem:[%s3128_s0 + $0x78] sm:$0xff]  }
  0x12   :  { %2259 = vmatpush3.bf16.msra.mxu0 %v2321_v9  ;;  %v2339_v56 = vld [vmem:[%s3128_s0 + $0x80] sm:$0xff]   ;;  %v2340_v57 = vld [vmem:[%s3128_s0 + $0x88] sm:$0xff]  }
  0x13   :  { %2260 = vmatprep.subr.bf16.mxu0 %v2322_v10  ;;  %532 = vperm.xlu1 %2317, %v480_v22   ;;  %v2679_v2 = vld [vmem:[%s3130_s3] ss:$0 sm:$0xff]  ;;  %s2432_s3 = smov 64  }
  0x15   :  { %527 = vperm.xlu0 %2316, %v479_v23  }
  0x16   :  { %2261 = vmatpush3.bf16.msra.mxu0 %v2322_v10 }
  0x17   :  { %542 = vperm.xlu1 %2317, %v482_v25  }
  0x19   :  { %2263 = vmatmul.mubr.msk.bf16.vlgmr.msra.gmra.mxu0 %vm224_vm2, %v2324_v15  ;;  %537 = vperm.xlu0 %2316, %v481_v26  }
  0x1a   :  { %2266 = vmatprep.mubr.msk.bf16.mxu0 %vm224_vm2, %v2325_v18 }
  0x1b   :  { %562 = vperm.xlu1 %2317, %v486_v28  }
  0x1d   :  { %557 = vperm.xlu0 %2316, %v485_v29  }
  0x1f   :  { %572 = vperm.xlu1 %2317, %v488_v31  }
  0x21   :  { %2267 = vmatmul.mubr.msk.bf16.gmra.mxu0 %vm224_vm2, %v2326_v21  ;;  %567 = vperm.xlu0 %2316, %v487_v32  }
  0x22   :  { %2270 = vmatprep.mubr.msk.bf16.mxu0 %vm224_vm2, %v2327_v24 }
  0x23   :  { %592 = vperm.xlu1 %2317, %v492_v34  }
  0x25   :  { %587 = vperm.xlu0 %2316, %v491_v35   ;;  %v2341_v35 = vld [vmem:[%s3131_s4 + $0x78] sm:$0xff]  }
  0x26   :  { %2132 = vmatprep.subr.bf16.mxu1 %v2341_v35 }
  0x27   :  { %632 = vperm.xlu1 %2317, %v500_v37  }
  0x29   :  { %2271 = vmatmul.mubr.msk.bf16.gmra.mxu0 %vm224_vm2, %v2328_v27  ;;  %627 = vperm.xlu0 %2316, %v499_v38  }
  0x2a   :  { %2274 = vmatprep.mubr.msk.bf16.mxu0 %vm224_vm2, %v2329_v30 }
  0x2b   :  { %552 = vperm.xlu1 %2317, %v484_v40  }
  0x2d   :  { %547 = vperm.xlu0 %2316, %v483_v41  }
  0x2f   :  { %582 = vperm.xlu1 %2317, %v490_v43  }
  0x31   :  { %2275 = vmatmul.mubr.msk.bf16.gmra.mxu0 %vm224_vm2, %v2330_v33  ;;  %577 = vperm.xlu0 %2316, %v489_v44  }
  0x32   :  { %2278 = vmatprep.mubr.msk.bf16.mxu0 %vm224_vm2, %v2331_v36 }
  0x33   :  { %602 = vperm.xlu1 %2317, %v494_v46  }
  0x35   :  { %597 = vperm.xlu0 %2316, %v493_v47  }
  0x37   :  { %642 = vperm.xlu1 %2317, %v502_v49   ;;  %v2342_v49 = vld [vmem:[%s3131_s4 + $0x38] sm:$0xff]  }
  0x38   :  { %2133 = vmatpush3.bf16.msra.mxu1 %v2342_v49 }
  0x39   :  { %2279 = vmatmul.mubr.msk.bf16.gmra.mxu0 %vm224_vm2, %v2332_v39  ;;  %637 = vperm.xlu0 %2316, %v501_v50  }
  0x3a   :  { %2282 = vmatprep.mubr.msk.bf16.mxu0 %vm224_vm2, %v2333_v42 }
  0x3b   :  { %652 = vperm.xlu1 %2317, %v504_v52  }
  0x3d   :  { %647 = vperm.xlu0 %2316, %v503_v53  }
  0x41   :  { %2283 = vmatmul.mubr.msk.bf16.gmra.mxu0 %vm224_vm2, %v2334_v45 }
  0x42   :  { %2286 = vmatprep.mubr.msk.bf16.mxu0 %vm224_vm2, %v2335_v48 }
  0x49   :  { %2287 = vmatmul.mubr.msk.bf16.gmra.mxu0 %vm224_vm2, %v2336_v51 }
  0x4a   :  { %2290 = vmatprep.mubr.msk.bf16.mxu0 %vm224_vm2, %v2337_v54 }
  0x51   :  { %2291 = vmatmul.mubr.msk.bf16.gmra.mxu0 %vm224_vm2, %v2338_v55 }
  0x52   :  { %2294 = vmatprep.mubr.msk.bf16.mxu0 %vm224_vm2, %v2339_v56 }
  0x59   :  { %2295 = vmatmul.mubr.msk.bf16.gmra.mxu0 %vm224_vm2, %v2340_v57  ;;  %v2343_v57 = vld [vmem:[%s3131_s4 + $0x70] sm:$0xff]  }
  0x5a   :  { %2134 = vmatprep.subr.bf16.mxu1 %v2343_v57 }
  0x7e   :  { %v2668_v58 = vpop.permute.xlu1 %617 }
  0x80   :  { %v2670_v59 = vpop.permute.xlu0 %607 }
  0x82   :  { %v2672_v60 = vpop.permute.xlu1 %622 }
  0x84   :  { %v2674_v61 = vpop.permute.xlu0 %612 }
  0x86   :  { %v513_v62 = vpop.permute.xlu1 %512 }
  0x88   :  { %v508_v63 = vpop.permute.xlu0 %507 }
  0x8a   :  { %v523_v0 = vpop.permute.xlu1 %522 }
  0x8c   :  { %v518_v3 = vpop.permute.xlu0 %517 }
  0x8e   :  { %v533_v9 = vpop.permute.xlu1 %532 }
  0x90   :  { %v528_v11 = vpop.permute.xlu0 %527 }
  0x92   :  { %v543_v22 = vpop.permute.xlu1 %542 }
  0x94   :  { %v538_v24 = vpop.permute.xlu0 %537 }
  0x96   :  { %v563_v39 = vpop.permute.xlu1 %562 }
  0x98   :  { %v558_v41 = vpop.permute.xlu0 %557 }
  0x9a   :  { %v573_v53 = vpop.permute.xlu1 %572 }
  0x9c   :  { %v568_v55 = vpop.permute.xlu0 %567 }
  0xd9   :  { %v2264_v1 = vpop.f32.mrf.mxu0 }
  0xda   :  { %v335_v5 = vadd.f32 %v2264_v1, %v2679_v2  ;;  %v2346_v1 = vld [vmem:[%s3131_s4 + $0x28] sm:$0xff]  }
  0xdb   :  { %v326_v4 = vpop.f32.mrf.mxu0 }
  0xdc   :  { %v327_v7 = vadd.f32 %v2679_v2, %v326_v4  ;;  %v657_v12 = vmul.f32 %v518_v3, %v335_v5  ;;  %v2347_v5 = vld [vmem:[%s3131_s4 + $0x60] sm:$0xff]  }
  0xdd   :  { %v2265_v6 = vpop.f32.mrf.mxu0 }
  0xde   :  { %v338_v8 = vadd.f32 %v2265_v6, %v2679_v2  ;;  %v655_v16 = vmul.f32 %v508_v63, %v327_v7  ;;  %v2344_v63 = vld [vmem:[%s3131_s4 + $0x30] sm:$0xff]   ;;  %v593_v6 = vpop.permute.xlu1 %592 }
  0xdf   :  { %v329_v10 = vpop.f32.mrf.mxu0  ;;  %2135 = vmatpush3.bf16.msra.mxu1 %v2344_v63 }
  0xe0   :  { %v658_v13 = vmul.f32 %v523_v0, %v338_v8  ;;  %v330_v14 = vadd.f32 %v2679_v2, %v329_v10  ;;  %v2345_v0 = vld [vmem:[%s3131_s4 + $0x68] sm:$0xff]   ;;  %v588_v8 = vpop.permute.xlu0 %587 }
  0xe1   :  { %v2268_v15 = vpop.f32.mrf.mxu0  ;;  %2136 = vmatprep.subr.bf16.mxu1 %v2345_v0 }
  0xe2   :  { %v2685_v17 = vpack.c.bf16 %v658_v13, %v657_v12  ;;  %v656_v18 = vmul.f32 %v513_v62, %v330_v14  ;;  %v351_v21 = vadd.f32 %v2268_v15, %v2679_v2  ;;  %v2349_v14 = vld [vmem:[%s3131_s4 + $0x58] sm:$0xff]  }
  0xe3   :  { %v342_v19 = vpop.f32.mrf.mxu0  ;;  %2137 = vmatpush3.bf16.msra.mxu1 %v2346_v1 }
  0xe4   :  { %v2687_v20 = vpack.c.bf16 %v656_v18, %v655_v16  ;;  %v343_v25 = vadd.f32 %v2679_v2, %v342_v19  ;;  %v740_v28 = vrot.slane %v2685_v17, 4  ;;  %v661_v30 = vmul.f32 %v538_v24, %v351_v21  ;;  %2138 = vmatprep.subr.bf16.mxu1 %v2347_v5  ;;  %v2749_v18 = vpop.permute.xlu1 %632  ;;  %v2751_v21 = vpop.permute.xlu0 %627 }
  0xe5   :  { %v2269_v23 = vpop.f32.mrf.mxu0 }
  0xe6   :  { %v354_v26 = vadd.f32 %v2269_v23, %v2679_v2  ;;  %v739_v27 = vrot.slane %v2687_v20, 4  ;;  %v659_v36 = vmul.f32 %v528_v11, %v343_v25  ;;  %v2348_v11 = vld [vmem:[%s3131_s4 + $0x20] sm:$0xff]   ;;  %v2350_v25 = vld [vmem:[%s3131_s4 + $0x18] sm:$0xff]  }
  0xe7   :  { %v345_v29 = vpop.f32.mrf.mxu0  ;;  %2139 = vmatpush3.bf16.msra.mxu1 %v2348_v11 }
  0xe8   :  { %v662_v31 = vmul.f32 %v543_v22, %v354_v26  ;;  %v346_v32 = vadd.f32 %v2679_v2, %v345_v29  ;;  %v741_v33 = vsel %vm709_vm3, %v739_v27, %v740_v28  ;;  %2140 = vmatprep.subr.bf16.mxu1 %v2349_v14  ;;  %v2351_v27 = vld [vmem:[%s3131_s4 + $0x50] sm:$0xff]   ;;  %v548_v35 = vpop.permute.xlu0 %547  ;;  %v2801_v14 = vld [vmem:[%s3131_s4 + $0x88] sm:$0xff]  }
  0xe9   :  { %v2272_v34 = vpop.f32.mrf.mxu0  ;;  %743 = vrot.lane.b32.xlu0 %v741_v33, %s2432_s3 }
  0xea   :  { %v2702_v37 = vpack.c.bf16 %v662_v31, %v661_v30  ;;  %v660_v38 = vmul.f32 %v533_v9, %v346_v32  ;;  %v367_v43 = vadd.f32 %v2272_v34, %v2679_v2  ;;  %v553_v31 = vpop.permute.xlu1 %552  ;;  %v2352_v34 = vld [vmem:[%s3131_s4 + $0x10] sm:$0xff]  }
  0xeb   :  { %v2704_v40 = vpop.f32.mrf.mxu0  ;;  %2141 = vmatpush3.bf16.msra.mxu1 %v2350_v25 }
  0xec   :  { %v687_v42 = vpack.c.bf16 %v660_v38, %v659_v36  ;;  %v711_v47 = vrot.slane %v2702_v37, 4  ;;  %v665_v50 = vmul.f32 %v558_v41, %v367_v43  ;;  %2142 = vmatprep.subr.bf16.mxu1 %v2351_v27  ;;  %v359_v32 = vadd.f32 %v2679_v2, %v2704_v40  ;;  %v2354_v40 = vld [vmem:[%s3131_s4 + $0x8] sm:$0xff]  }
  0xed   :  { %v2273_v44 = vpop.f32.mrf.mxu0 }
  0xee   :  { %v2707_v45 = vrot.slane %v687_v42, 4  ;;  %v370_v46 = vadd.f32 %v2273_v44, %v2679_v2  ;;  %v663_v42 = vmul.f32 %v548_v35, %v359_v32 }
  0xef   :  { %v361_v48 = vpop.f32.mrf.mxu0  ;;  %2143 = vmatpush3.bf16.msra.mxu1 %v2352_v34 }
  0xf0   :  { %v666_v51 = vmul.f32 %v563_v39, %v370_v46  ;;  %v712_v52 = vsel %vm709_vm3, %v2707_v45, %v711_v47  ;;  %v362_v29 = vadd.f32 %v2679_v2, %v361_v48  ;;  %v2353_v39 = vld [vmem:[%s3131_s4 + $0x48] sm:$0xff]   ;;  %v583_v46 = vpop.permute.xlu1 %582 }
  0xf1   :  { %v2718_v54 = vpop.f32.mrf.mxu0  ;;  %715 = vrot.lane.b32.xlu1 %v712_v52, %s2432_s3  ;;  %2144 = vmatprep.subr.bf16.mxu1 %v2353_v39 }
  0xf2   :  { %v690_v56 = vpack.c.bf16 %v666_v51, %v665_v50  ;;  %v664_v36 = vmul.f32 %v553_v31, %v362_v29  ;;  %v578_v50 = vpop.permute.xlu0 %577  ;;  %v383_v35 = vadd.f32 %v2718_v54, %v2679_v2  ;;  %v742_v54 = vsel %vm709_vm3, %v740_v28, %v2707_v45 }
  0xf3   :  { %v374_v62 = vpop.f32.mrf.mxu0  ;;  %2145 = vmatpush3.bf16.msra.mxu1 %v2354_v40 }
  0xf4   :  { %v375_v4 = vadd.f32 %v2679_v2, %v374_v62  ;;  %v748_v22 = vrot.slane %v690_v56, 4  ;;  %v2780_v48 = vpack.c.bf16 %v664_v36, %v663_v42 }
  0xf5   :  { %v2733_v3 = vpop.f32.mrf.mxu0  ;;  %702 = vrot.lane.b32.xlu1 %v690_v56, %s2433_s27  ;;  %v2356_v56 = vld [vmem:[%s3131_s4] sm:$0xff]  }
  0xf6   :  { %v667_v12 = vmul.f32 %v568_v55, %v375_v4  ;;  %v713_v4 = vrot.slane %v2780_v48, 4 }
  0xf7   :  { %v377_v7 = vpop.f32.mrf.mxu0 }
  0xf8   :  { %v378_v9 = vadd.f32 %v2679_v2, %v377_v7  ;;  %v603_v7 = vpop.permute.xlu1 %602 }
  0xf9   :  { %v2280_v10 = vpop.f32.mrf.mxu0 }
  0xfa   :  { %v668_v13 = vmul.f32 %v573_v53, %v378_v9  ;;  %v2355_v53 = vld [vmem:[%s3131_s4 + $0x40] sm:$0xff]   ;;  %v598_v9 = vpop.permute.xlu0 %597 }
  0xfb   :  { %v390_v15 = vpop.f32.mrf.mxu0  ;;  %2146 = vmatprep.subr.bf16.mxu1 %v2355_v53 }
  0xfc   :  { %v2747_v16 = vpack.c.bf16 %v668_v13, %v667_v12  ;;  %2147 = vmatpush3.bf16.msra.mxu1 %v2356_v56  ;;  %v643_v32 = vpop.permute.xlu1 %642 }
  0xfd   :  { %v2281_v19 = vpop.f32.mrf.mxu0  ;;  %2302 = vmatprep.subr.bf16.mxu1 %v2801_v14 }
  0xfe   :  { %v749_v23 = vrot.slane %v2747_v16, 4  ;;  %704 = vrot.lane.b32.xlu1 %v2747_v16, %s2433_s27  ;;  %v638_v34 = vpop.permute.xlu0 %637 }
  0xff   :  { %v392_v24 = vpop.f32.mrf.mxu0 }
 0x100   :  { %v750_v26 = vsel %vm709_vm3, %v748_v22, %v749_v23  ;;  %v714_v22 = vsel %vm709_vm3, %v711_v47, %v713_v4 }
 0x101   :  { %v2284_v30 = vpop.f32.mrf.mxu0  ;;  %753 = vrot.lane.b32.xlu0 %v750_v26, %s2434_s16 }
 0x102   :  { %v411_v0 = vadd.f32 %v2284_v30, %v2679_v2  ;;  %v386_v30 = vadd.f32 %v2733_v3, %v2679_v2 }
 0x103   :  { %v402_v33 = vpop.f32.mrf.mxu0 }
 0x104   :  { %v403_v41 = vadd.f32 %v2679_v2, %v402_v33  ;;  %v673_v15 = vmul.f32 %v598_v9, %v411_v0 }
 0x105   :  { %v2285_v38 = vpop.f32.mrf.mxu0 }
 0x106   :  { %v671_v51 = vmul.f32 %v588_v8, %v403_v41  ;;  %v414_v57 = vadd.f32 %v2285_v38, %v2679_v2 }
 0x107   :  { %v405_v43 = vpop.f32.mrf.mxu0 }
 0x108   :  { %v406_v44 = vadd.f32 %v2679_v2, %v405_v43  ;;  %v674_v10 = vmul.f32 %v603_v7, %v414_v57  ;;  %v670_v43 = vmul.f32 %v583_v46, %v386_v30 }
 0x109   :  { %v2288_v49 = vpop.f32.mrf.mxu0 }
 0x10a   :  { %v672_v52 = vmul.f32 %v593_v6, %v406_v44  ;;  %v427_v62 = vadd.f32 %v2288_v49, %v2679_v2  ;;  %v694_v29 = vpack.c.bf16 %v674_v10, %v673_v15 }
 0x10b   :  { %v418_v55 = vpop.f32.mrf.mxu0 }
 0x10c   :  { %v693_v63 = vpack.c.bf16 %v672_v52, %v671_v51  ;;  %v419_v5 = vadd.f32 %v2679_v2, %v418_v55  ;;  %v677_v11 = vmul.f32 %v2668_v58, %v427_v62  ;;  %v669_v52 = vmul.f32 %v578_v50, %v383_v35  ;;  %v653_v50 = vpop.permute.xlu1 %652  ;;  %v2370_v35 = vld [vmem:[%s3132_s6 + $0x38] sm:$0xff]  }
 0x10d   :  { %v2289_v1 = vpop.f32.mrf.mxu0 }
 0x10e   :  { %v430_v6 = vadd.f32 %v2289_v1, %v2679_v2  ;;  %721 = vrot.lane.b32.xlu1 %v693_v63, %s2434_s16  ;;  %v675_v24 = vmul.f32 %v2670_v59, %v419_v5  ;;  %v692_v56 = vpack.c.bf16 %v670_v43, %v669_v52  ;;  %v648_v63 = vpop.permute.xlu0 %647 }
 0x10f   :  { %v421_v8 = vpop.f32.mrf.mxu0 }
 0x110   :  { %v678_v12 = vmul.f32 %v2672_v60, %v430_v6  ;;  %v422_v13 = vadd.f32 %v2679_v2, %v421_v8 }
 0x111   :  { %v2292_v19 = vpop.f32.mrf.mxu0 }
 0x112   :  { %v696_v25 = vpack.c.bf16 %v678_v12, %v677_v11  ;;  %v676_v58 = vmul.f32 %v2674_v61, %v422_v13  ;;  %717 = vrot.lane.b32.xlu1 %v714_v22, %s2432_s3  ;;  %v443_v27 = vadd.f32 %v2292_v19, %v2679_v2  ;;  %v2358_v13 = vld [vmem:[%s3131_s4 + $0x80] sm:$0xff]  }
 0x113   :  { %v434_v60 = vpop.f32.mrf.mxu0 }
 0x114   :  { %v695_v26 = vpack.c.bf16 %v676_v58, %v675_v24  ;;  %v729_v47 = vrot.slane %v696_v25, 4  ;;  %v435_v59 = vadd.f32 %v2679_v2, %v434_v60  ;;  %v681_v38 = vmul.f32 %v638_v34, %v443_v27  ;;  %v2369_v34 = vld [vmem:[%s3132_s6 + $0x78] sm:$0xff]  }
 0x115   :  { %v2293_v31 = vpop.f32.mrf.mxu0 }
 0x116   :  { %v728_v33 = vrot.slane %v695_v26, 4  ;;  %v446_v61 = vadd.f32 %v2293_v31, %v2679_v2  ;;  %723 = vrot.lane.b32.xlu1 %v694_v29, %s2434_s16  ;;  %v679_v40 = vmul.f32 %v2751_v21, %v435_v59  ;;  %v751_v21 = vrot.slane %v692_v56, 4  ;;  %v2360_v31 = vld [vmem:[%s3132_s6 + $0xb8] sm:$0xff]   ;;  %v2366_v59 = vld [vmem:[%s3132_s6 + $0xa0] sm:$0xff]  }
 0x117   :  { %v437_v36 = vpop.f32.mrf.mxu0  ;;  %v2017_v56 = vld [vmem:[%s3133_s5] ss:$0 sm:$0xff] }
 0x118   :  { %v682_v39 = vmul.f32 %v643_v32, %v446_v61  ;;  %v438_v41 = vadd.f32 %v2679_v2, %v437_v36  ;;  %v730_v3 = vsel %vm709_vm3, %v728_v33, %v729_v47  ;;  %v2361_v32 = vld [vmem:[%s3132_s6 + $0xf0] sm:$0xff]   ;;  %v2365_v33 = vld [vmem:[%s3132_s6 + $0xe0] sm:$0xff]   ;;  %v2367_v61 = vld [vmem:[%s3132_s6 + $0xd8] sm:$0xff]  }
 0x119   :  { %v2296_v42 = vpop.f32.mrf.mxu0  ;;  %733 = vrot.lane.b32.xlu0 %v730_v3, %s2433_s27  ;;  %v2368_v36 = vld [vmem:[%s3132_s6 + $0x98] sm:$0xff]  }
 0x11a   :  { %v698_v44 = vpack.c.bf16 %v682_v39, %v681_v38  ;;  %v680_v49 = vmul.f32 %v2749_v18, %v438_v41  ;;  %v752_v18 = vsel %vm709_vm3, %v749_v23, %v751_v21 }
 0x11b   :  { %v450_v51 = vpop.f32.mrf.mxu0 }
 0x11c   :  { %v697_v53 = vpack.c.bf16 %v680_v49, %v679_v40  ;;  %v451_v23 = vadd.f32 %v2679_v2, %v450_v51  ;;  %v2435_v51 = vmov 1966171168  }
 0x11d   :  { %v2297_v55 = vpop.f32.mrf.mxu0  ;;  %745 = vrot.lane.b32.xlu0 %v742_v54, %s2432_s3  ;;  %v1057_v52 = vunpack.c.l.s4 %v2435_v51  ;;  %v2388_v51 = vld [vmem:[%s3132_s6 + $0xc0] sm:$0xff]  }
 0x11e   :  { %v731_v57 = vrot.slane %v697_v53, 4  ;;  %v683_v19 = vmul.f32 %v648_v63, %v451_v23  ;;  %v1059_v55 = vlaneseq }
 0x11f   :  { %v453_v1 = vpop.f32.mrf.mxu0 }
 0x120   :  { %v732_v46 = vsel %vm709_vm3, %v729_v47, %v731_v57  ;;  %v454_v5 = vadd.f32 %v2679_v2, %v453_v1  ;;  %v2364_v47 = vld [vmem:[%s3132_s6 + $0xa8] sm:$0xff]   ;;  %v2373_v1 = vld [vmem:[%s3132_s6 + $0x30] sm:$0xff]  }
 0x121   :  { %735 = vrot.lane.b32.xlu0 %v732_v46, %s2433_s27 }
 0x122   :  { %v684_v10 = vmul.f32 %v653_v50, %v454_v5  ;;  %v1058_v50 = vunpack.c.0.s8 %v1057_v52  ;;  %v2372_v5 = vld [vmem:[%s3132_s6 + $0xd0] sm:$0xff]   ;;  %v2387_v52 = vld [vmem:[%s3132_s6 + $0x48] sm:$0xff]  }
 0x124   :  { %v699_v22 = vpack.c.bf16 %v684_v10, %v683_v19 }
 0x125   :  { %755 = vrot.lane.b32.xlu0 %v752_v18, %s2434_s16 }
 0x15b   :  { %v744_v45 = vpop.permute.xlu0 %743 }
 0x163   :  { %v716_v62 = vpop.permute.xlu1 %715 }
 0x167   :  { %v703_v28 = vpop.permute.xlu1 %702 }
 0x168   :  { %v760_v7 = vsel %vm757_vm4, %v2687_v20, %v703_v28 }
 0x169   :  { %v766_v12 = vsel %vm764_vm5, %v760_v7, %v716_v62  ;;  %v2371_v62 = vld [vmem:[%s3132_s6 + $0x70] sm:$0xff]  }
 0x170   :  { %v705_v0 = vpop.permute.xlu1 %704 }
 0x171   :  { %v763_v60 = vsel %vm757_vm4, %v2685_v17, %v705_v0  ;;  %v2359_v17 = vld [vmem:[%s3132_s6 + $0xf8] sm:$0xff]   ;;  %v1060_v0 = vshrl.u32 %v1059_v55, 7 }
 0x172   :  { %2186 = vmatprep.subr.bf16.mxu0 %v2359_v17 }
 0x173   :  { %v754_v4 = vpop.permute.xlu0 %753  ;;  %2187 = vmatpush3.bf16.msra.mxu0 %v2360_v31  ;;  %v2379_v31 = vld [vmem:[%s3132_s6 + $0xc8] sm:$0xff]  }
 0x174   :  { %2188 = vmatprep.subr.bf16.mxu0 %v2361_v32  ;;  %v2380_v32 = vld [vmem:[%s3132_s6 + $0x88] sm:$0xff]  }
 0x180   :  { %v722_v6 = vpop.permute.xlu1 %721 }
 0x181   :  { %v771_v15 = vsel %vm769_vm6, %v766_v12, %v722_v6  ;;  %v2374_v6 = vld [vmem:[%s3132_s6 + $0x90] sm:$0xff]  }
 0x184   :  { %v718_v2 = vpop.permute.xlu1 %717 }
 0x185   :  { %v768_v29 = vsel %vm764_vm5, %v763_v60, %v718_v2 }
 0x188   :  { %v724_v58 = vpop.permute.xlu1 %723 }
 0x18b   :  { %v734_v16 = vpop.permute.xlu0 %733 }
 0x18c   :  { %v778_v8 = vsel %vm757_vm4, %v698_v44, %v734_v16 }
 0x18d   :  { %v783_v9 = vsel %vm764_vm5, %v778_v8, %v744_v45 }
 0x18e   :  { %v787_v11 = vsel %vm769_vm6, %v783_v9, %v754_v4 }
 0x18f   :  { %981 = vmatprep.mubr.bf16.mxu1 %v787_v11  ;;  %v746_v20 = vpop.permute.xlu0 %745  ;;  %v2909_v11 = vsub.s32 %v1058_v50, %v1060_v0  ;;  %v2392_v50 = vld [vmem:[%s3132_s6] sm:$0xff]  }
 0x190   :  { %982 = vmatmul.mubr.bf16.vlgmr.msra.gmra.mxu1 %v771_v15 }
 0x191   :  { %2303 = vmatpush3.bf16.msra.mxu1 %v2801_v14  ;;  %v774_v14 = vsel %vm769_vm6, %v768_v29, %v724_v58 }
 0x192   :  { %2304 = vmatprep.subr.bf16.mxu1 %v2358_v13 }
 0x193   :  { %v736_v24 = vpop.permute.xlu0 %735 }
 0x194   :  { %v781_v25 = vsel %vm757_vm4, %v699_v22, %v736_v24 }
 0x195   :  { %2305 = vmatpush3.bf16.msra.mxu1 %v2358_v13  ;;  %v785_v27 = vsel %vm764_vm5, %v781_v25, %v746_v20  ;;  %v2375_v13 = vld [vmem:[%s3132_s6 + $0x68] sm:$0xff]  }
 0x196   :  { %2164 = vmatprep.subr.bf16.mxu1 %v2369_v34  ;;  %v2376_v20 = vld [vmem:[%s3132_s6 + $0x28] sm:$0xff]  }
 0x197   :  { %v756_v26 = vpop.permute.xlu0 %755 }
 0x198   :  { %v790_v30 = vsel %vm769_vm6, %v785_v27, %v756_v26  ;;  %v2377_v26 = vld [vmem:[%s3132_s6 + $0x60] sm:$0xff]  }
 0x199   :  { %989 = vmatprep.mubr.bf16.mxu1 %v790_v30  ;;  %v2378_v27 = vld [vmem:[%s3132_s6 + $0x20] sm:$0xff]  }
 0x19a   :  { %990 = vmatmul.mubr.bf16.gmra.mxu1 %v774_v14 }
 0x19b   :  { %2306 = vmatprep.mubr.msk.bf16.mxu1 %vm757_vm4, %v2702_v37  ;;  %v2362_v37 = vld [vmem:[%s3132_s6 + $0xb0] sm:$0xff]  }
 0x19c   :  { %2189 = vmatpush3.bf16.msra.mxu0 %v2362_v37 }
 0x1a2   :  { %2307 = vmatmul.mubr.msk.bf16.vlgmr.msra.gmra.mxu1 %vm757_vm4, %v2780_v48  ;;  %v2363_v48 = vld [vmem:[%s3132_s6 + $0xe8] sm:$0xff]  }
 0x1a3   :  { %2190 = vmatprep.subr.bf16.mxu0 %v2363_v48  ;;  %2165 = vmatpush3.bf16.msra.mxu1 %v2370_v35  ;;  %v2382_v35 = vld [vmem:[%s3132_s6 + $0x18] sm:$0xff]  }
 0x1a4   :  { %2191 = vmatpush3.bf16.msra.mxu0 %v2364_v47  ;;  %2166 = vmatprep.subr.bf16.mxu1 %v2371_v62 }
 0x1a5   :  { %2192 = vmatprep.subr.bf16.mxu0 %v2365_v33  ;;  %v2381_v33 = vld [vmem:[%s3132_s6 + $0x58] sm:$0xff]  }
 0x1a7   :  { %2167 = vmatpush3.bf16.msra.mxu1 %v2373_v1 }
 0x1a8   :  { %2193 = vmatpush3.bf16.msra.mxu0 %v2366_v59  ;;  %2168 = vmatprep.subr.bf16.mxu1 %v2375_v13 }
 0x1a9   :  { %2194 = vmatprep.subr.bf16.mxu0 %v2367_v61 }
 0x1ab   :  { %2169 = vmatpush3.bf16.msra.mxu1 %v2376_v20 }
 0x1ac   :  { %2195 = vmatpush3.bf16.msra.mxu0 %v2368_v36  ;;  %2170 = vmatprep.subr.bf16.mxu1 %v2377_v26 }
 0x1ad   :  { %2196 = vmatprep.subr.bf16.mxu0 %v2372_v5 }
 0x1af   :  { %2171 = vmatpush3.bf16.msra.mxu1 %v2378_v27  ;;  %v2399_v27 = vld [vmem:[%s3132_s6 + $0x130] sm:$0xff]  }
 0x1b0   :  { %2197 = vmatpush3.bf16.msra.mxu0 %v2374_v6  ;;  %2172 = vmatprep.subr.bf16.mxu1 %v2381_v33  ;;  %v2409_v33 = vld [vmem:[%s3132_s6 + $0x1a0] sm:$0xff]  }
 0x1b1   :  { %2198 = vmatprep.subr.bf16.mxu0 %v2379_v31  ;;  %v2406_v31 = vld [vmem:[%s3132_s6 + $0x160] sm:$0xff]  }
 0x1b3   :  { %2173 = vmatpush3.bf16.msra.mxu1 %v2382_v35  ;;  %v2413_v35 = vld [vmem:[%s3132_s6 + $0x198] sm:$0xff]  }
 0x1b4   :  { %2199 = vmatpush3.bf16.msra.mxu0 %v2380_v32  ;;  %v2405_v32 = vld [vmem:[%s3132_s6 + $0x1a8] sm:$0xff]  }
 0x1b5   :  { %2200 = vmatprep.subr.bf16.mxu0 %v2388_v51  ;;  %v2425_v51 = vld [vmem:[%s3132_s6 + $0x180] sm:$0xff]  }
 0x250   :  { %v2148_v38 = vpop.f32.mrf.mxu1 }
 0x252   :  { %v2149_v39 = vpop.f32.mrf.mxu1 }
 0x253   :  { %v2150_v53 = vadd.f32 %v2149_v39, %v2148_v38 }
 0x254   :  { %v2151_v41 = vpop.f32.mrf.mxu1 }
 0x255   :  { %v984_v28 = vadd.f32 %v2150_v53, %v2017_v56  ;;  %v2390_v53 = vld [vmem:[%s3132_s6 + $0x80] sm:$0xff]  }
 0x256   :  { %v2152_v3 = vpop.f32.mrf.mxu1  ;;  %2201 = vmatpush3.bf16.msra.mxu0 %v2390_v53 }
 0x257   :  { %v2153_v46 = vadd.f32 %v2152_v3, %v2151_v41 }
 0x259   :  { %v987_v23 = vadd.f32 %v2153_v46, %v2017_v56  ;;  %v2391_v46 = vld [vmem:[%s3132_s6 + $0x40] sm:$0xff]  }
 0x25a   :  { %v2154_v42 = vpop.f32.mrf.mxu1 }
 0x25c   :  { %v2155_v43 = vpop.f32.mrf.mxu1 }
 0x25d   :  { %v2156_v44 = vadd.f32 %v2155_v43, %v2154_v42  ;;  %v2383_v43 = vld [vmem:[%s3128_s0 + $0x90] sm:$0xff]  }
 0x25e   :  { %v2157_v40 = vpop.f32.mrf.mxu1  ;;  %2298 = vmatprep.mubr.msk.bf16.mxu0 %vm224_vm2, %v2383_v43  ;;  %v2422_v43 = vld [vmem:[%s3132_s6 + $0x140] sm:$0xff]  }
 0x25f   :  { %v992_v21 = vadd.f32 %v2156_v44, %v2017_v56  ;;  %v2385_v44 = vld [vmem:[%s3128_s0 + $0x98] sm:$0xff]  }
 0x260   :  { %v2158_v49 = vpop.f32.mrf.mxu1  ;;  %2299 = vmatmul.mubr.msk.bf16.gmra.mxu0 %vm224_vm2, %v2385_v44  ;;  %v2424_v44 = vld [vmem:[%s3132_s6 + $0x1c0] sm:$0xff]  }
 0x261   :  { %v2159_v54 = vadd.f32 %v2158_v49, %v2157_v40  ;;  %v2384_v40 = vld [vmem:[%s3132_s6 + $0x50] sm:$0xff]  }
 0x262   :  { %v2308_v57 = vpop.f32.mrf.mxu1  ;;  %v2386_v49 = vld [vmem:[%s3132_s6 + $0x10] sm:$0xff]   ;;  %2174 = vmatprep.subr.bf16.mxu1 %v2384_v40  ;;  %v2421_v40 = vld [vmem:[%s3132_s6 + $0x188] sm:$0xff]  }
 0x263   :  { %v1041_v63 = vadd.f32 %v2308_v57, %v992_v21  ;;  %v995_v45 = vadd.f32 %v2159_v54, %v2017_v56  ;;  %2175 = vmatpush3.bf16.msra.mxu1 %v2386_v49  ;;  %v2389_v57 = vld [vmem:[%s3132_s6 + $0x8] sm:$0xff]   ;;  %v2423_v49 = vld [vmem:[%s3132_s6 + $0x100] sm:$0xff]  }
 0x264   :  { %v1032_v18 = vpop.f32.mrf.mxu1  ;;  %2176 = vmatprep.subr.bf16.mxu1 %v2387_v52 }
 0x265   :  { %v1033_v7 = vadd.f32 %v1032_v18, %v984_v28  ;;  %v1049_v9 = vmax.f32 %v1041_v63, 0.0  ;;  %v2393_v63 = vld [vmem:[%s3132_s6 + $0x178] sm:$0xff]  }
 0x266   :  { %v2309_v4 = vpop.f32.mrf.mxu1  ;;  %v2396_v28 = vld [vmem:[%s3132_s6 + $0x1f8] sm:$0xff]  }
 0x267   :  { %v1044_v16 = vadd.f32 %v2309_v4, %v995_v45  ;;  %v1047_v15 = vmax.f32 %v1033_v7, 0.0  ;;  %2177 = vmatpush3.bf16.msra.mxu1 %v2389_v57  ;;  %2230 = vmatprep.subr.bf16.mxu0 %v2396_v28 }
 0x268   :  { %v1035_v8 = vpop.f32.mrf.mxu1  ;;  %2178 = vmatprep.subr.bf16.mxu1 %v2391_v46  ;;  %v15_v46 = vstv %s3134_s9 }
 0x269   :  { %v1050_v10 = vmax.f32 %v1044_v16, 0.0  ;;  %v1036_v12 = vadd.f32 %v1035_v8, %v987_v23  ;;  %16 = vst [vmem:[#allocation3] sm:$0x1] %v15_v46 }
 0x26b   :  { %v1052_v19 = vpack.c.bf16 %v1050_v10, %v1049_v9  ;;  %v2039_v2 = vpack.c.bf16 %v1050_v10, %v1050_v10  ;;  %v1048_v22 = vmax.f32 %v1036_v12, 0.0  ;;  %2179 = vmatpush3.bf16.msra.mxu1 %v2392_v50 }
 0x26c   :  { %2208 = vmatprep.subr.bf16.mxu1 %v2393_v63 }
 0x26d   :  { %v1136_v24 = vrot.slane %v1052_v19, %v2909_v11  ;;  %v2919_v25 = vrot.slane %v2039_v2, %v2909_v11  ;;  %v1051_v58 = vpack.c.bf16 %v1048_v22, %v1047_v15  ;;  %v2038_v60 = vpack.c.bf16 %v1048_v22, %v1048_v22  ;;  %1128 = vst.msk [vmem:[#allocation2 + $0x4] sm:$0x1] %vm1053_vm7, %v1052_v19  ;;  %v2394_v15 = vld [vmem:[%s3132_s6 + $0x138] sm:$0xff]  }
 0x26f   :  { %v1062_v29 = vrot.slane %v1051_v58, %v2909_v11  ;;  %v1098_v30 = vrot.slane %v2038_v60, %v2909_v11  ;;  %v1137_v14 = vcombine.high %v1136_v24, %v1136_v24  ;;  %1054 = vst.msk [vmem:[#allocation2] sm:$0x1] %vm1053_vm7, %v1051_v58  ;;  %v1144_v17 = vrot.slane %v1136_v24, %v2909_v11  ;;  %v2397_v24 = vld [vmem:[%s3132_s6 + $0x1b8] sm:$0xff]   ;;  %v2400_v60 = vld [vmem:[%s3132_s6 + $0x1f0] sm:$0xff]  }
 0x270   :  { %v1178_v37 = vrot.slane %v2919_v25, %v2909_v11  ;;  %v1181_v56 = vcombine.high %v2919_v25, %v2919_v25  ;;  %v2398_v25 = vld [vmem:[%s3132_s6 + $0x170] sm:$0xff]  }
 0x271   :  { %v1151_v48 = vrot.slane %v1137_v14, %v2909_v11  ;;  %v1063_v47 = vcombine.high %v1062_v29, %v1062_v29  ;;  %v1156_v59 = vcombine.high %v1144_v17, %v1144_v17  ;;  %v1070_v61 = vrot.slane %v1062_v29, %v2909_v11  ;;  %v2402_v29 = vld [vmem:[%s3132_s6 + $0x168] sm:$0xff]  }
 0x272   :  { %v1105_v34 = vrot.slane %v1098_v30, %v2909_v11  ;;  %1180 = vst.msk [vmem:[#allocation2 + $0x6] sm:$0x1] %vm1053_vm7, %v1178_v37  ;;  %v1193_v36 = vcombine.high %v1178_v37, %v1178_v37  ;;  %v1108_v41 = vcombine.high %v1098_v30, %v1098_v30  ;;  %v1188_v18 = vrot.slane %v1181_v56, %v2909_v11  ;;  %v2401_v30 = vld [vmem:[%s3132_s6 + $0x1b0] sm:$0xff]   ;;  %v2404_v14 = vld [vmem:[%s3132_s6 + $0x1e8] sm:$0xff]   ;;  %v2408_v37 = vld [vmem:[%s3132_s6 + $0x1e0] sm:$0xff]  }
 0x273   :  { %1152 = vrot.lane.b32.xlu0 %v1151_v48, %s2432_s3  ;;  %v1159_v38 = vcombine.high %v1151_v48, %v1151_v48  ;;  %v1077_v39 = vrot.slane %v1063_v47, %v2909_v11  ;;  %1158 = vst.msk [vmem:[#allocation2 + $0x5] sm:$0x1] %vm1053_vm7, %v1156_v59  ;;  %v1083_v3 = vcombine.high %v1070_v61, %v1070_v61  ;;  %v2403_v17 = vld [vmem:[%s3132_s6 + $0x128] sm:$0xff]   ;;  %v2407_v48 = vld [vmem:[%s3132_s6 + $0x120] sm:$0xff]   ;;  %v2410_v47 = vld [vmem:[%s3132_s6 + $0x158] sm:$0xff]  }
 0x274   :  { %1107 = vst.msk [vmem:[#allocation2 + $0x2] sm:$0x1] %vm1053_vm7, %v1105_v34  ;;  %v1120_v42 = vcombine.high %v1105_v34, %v1105_v34  ;;  %1195 = vst.msk [vmem:[#allocation2 + $0x7] sm:$0x1] %vm1053_vm7, %v1193_v36  ;;  %v1115_v55 = vrot.slane %v1108_v41, %v2909_v11  ;;  %v1196_v62 = vcombine.high %v1188_v18, %v1188_v18  ;;  %v2412_v59 = vld [vmem:[%s3132_s6 + $0x1d8] sm:$0xff]   ;;  %v2414_v34 = vld [vmem:[%s3132_s6 + $0x150] sm:$0xff]  }
 0x275   :  { %1160 = vrot.lane.b32.xlu1 %v1159_v38, %s2432_s3  ;;  %1085 = vst.msk [vmem:[#allocation2 + $0x1] sm:$0x1] %vm1053_vm7, %v1083_v3  ;;  %v1086_v54 = vcombine.high %v1077_v39, %v1077_v39  ;;  %v2411_v61 = vld [vmem:[%s3132_s6 + $0x118] sm:$0xff]   ;;  %v2416_v36 = vld [vmem:[%s3132_s6 + $0x1d0] sm:$0xff]   ;;  %v2420_v3 = vld [vmem:[%s3132_s6 + $0x1c8] sm:$0xff]  }
 0x276   :  { %1122 = vst.msk [vmem:[#allocation2 + $0x3] sm:$0x1] %vm1053_vm7, %v1120_v42  ;;  %v1123_v21 = vcombine.high %v1115_v55, %v1115_v55  ;;  %v2415_v38 = vld [vmem:[%s3132_s6 + $0x110] sm:$0xff]   ;;  %v2419_v42 = vld [vmem:[%s3132_s6 + $0x108] sm:$0xff]  }
 0x277   :  { %1078 = vrot.lane.b32.xlu0 %v1077_v39, %s2432_s3  ;;  %v2418_v39 = vld [vmem:[%s3132_s6 + $0x148] sm:$0xff]   ;;  %v2417_v41 = vld [vmem:[%s3132_s6 + $0x190] sm:$0xff]  }
 0x279   :  { %1087 = vrot.lane.b32.xlu1 %v1086_v54, %s2432_s3 }
 0x27b   :  { %1116 = vrot.lane.b32.xlu0 %v1115_v55, %s2432_s3 }
 0x27d   :  { %1124 = vrot.lane.b32.xlu1 %v1123_v21, %s2432_s3 }
 0x27f   :  { %1189 = vrot.lane.b32.xlu0 %v1188_v18, %s2432_s3 }
 0x281   :  { %1197 = vrot.lane.b32.xlu1 %v1196_v62, %s2432_s3 }
 0x2e5   :  { %v1153_v45 = vpop.permute.xlu0 %1152 }
 0x2e6   :  { %1155 = vst.msk [vmem:[#allocation2 + $0x4] sm:$0x1] %vm1081_vm8, %v1153_v45 }
 0x2e7   :  { %v1161_v0 = vpop.permute.xlu1 %1160 }
 0x2e8   :  { %1163 = vst.msk [vmem:[#allocation2 + $0x5] sm:$0x1] %vm1081_vm8, %v1161_v0 }
 0x2e9   :  { %v1079_v1 = vpop.permute.xlu0 %1078 }
 0x2ea   :  { %1082 = vst.msk [vmem:[#allocation2] sm:$0x1] %vm1081_vm8, %v1079_v1  ;;  %v2040_v1 = vld [vmem:[%s3135_s7] ss:$0 sm:$0xff] }
 0x2eb   :  { %v1088_v4 = vpop.permute.xlu1 %1087 }
 0x2ec   :  { %1090 = vst.msk [vmem:[#allocation2 + $0x1] sm:$0x1] %vm1081_vm8, %v1088_v4 }
 0x2ed   :  { %v1117_v5 = vpop.permute.xlu0 %1116 }
 0x2ee   :  { %1119 = vst.msk [vmem:[#allocation2 + $0x2] sm:$0x1] %vm1081_vm8, %v1117_v5 }
 0x2ef   :  { %v1125_v6 = vpop.permute.xlu1 %1124 }
 0x2f0   :  { %1127 = vst.msk [vmem:[#allocation2 + $0x3] sm:$0x1] %vm1081_vm8, %v1125_v6 }
 0x2f1   :  { %v1190_v7 = vpop.permute.xlu0 %1189 }
 0x2f2   :  { %1192 = vst.msk [vmem:[#allocation2 + $0x6] sm:$0x1] %vm1081_vm8, %v1190_v7 }
 0x2f3   :  { %v1198_v16 = vpop.permute.xlu1 %1197 }
 0x2f4   :  { %1200 = vst.msk [vmem:[#allocation2 + $0x7] sm:$0x1] %vm1081_vm8, %v1198_v16 }
 0x2fb   :  { %v1201_v23 = vld [vmem:[#allocation2] sm:$0xff] }
 0x2fc   :  { %v1345_v8 = vrot.slane %v1201_v23, %v2909_v11  ;;  %v1338_v9 = vcombine.high %v1201_v23, %v1201_v23 }
 0x2fe   :  { %v1353_v10 = vcombine.high %v1345_v8, %v1345_v8  ;;  %v3016_v12 = vrot.slane %v1338_v9, %v2909_v11  ;;  %v1361_v13 = vrot.slane %v1345_v8, %v2909_v11 }
 0x300   :  { %v1375_v20 = vrot.slane %v1353_v10, %v2909_v11  ;;  %v1354_v19 = vcombine.high %v3016_v12, %v3016_v12  ;;  %v1383_v58 = vcombine.high %v1361_v13, %v1361_v13  ;;  %v1368_v52 = vrot.slane %v3016_v12, %v2909_v11 }
 0x302   :  { %1811 = vmatprep.mubr.bf16.mxu1 %v1375_v20  ;;  %v1385_v2 = vcombine.high %v1375_v20, %v1375_v20  ;;  %v1382_v22 = vrot.slane %v1354_v19, %v2909_v11  ;;  %v1384_v53 = vcombine.high %v1368_v52, %v1368_v52  ;;  %v2105_v19 = vld [vmem:[%s3136_s8] ss:$0 sm:$0xff] }
 0x303   :  { %1812 = vmatmul.mubr.bf16.vlgmr.msra.gmra.mxu1 %v1361_v13 }
 0x304   :  { %2209 = vmatpush3.bf16.msra.mxu1 %v2394_v15  ;;  %1851 = vmatprep.mubr.bf16.mxu0 %v1385_v2  ;;  %v1386_v26 = vcombine.high %v1382_v22, %v1382_v22 }
 0x305   :  { %1891 = vmatprep.mubr.bf16.mxu1 %v1382_v22  ;;  %1852 = vmatmul.mubr.bf16.vlgmr.msra.gmra.mxu0 %v1383_v58  ;;  %v2106_v58 = vld [vmem:[#allocation3] ss:$0 sm:$0xff] }
 0x306   :  { %2231 = vmatpush3.bf16.msra.mxu0 %v2397_v24  ;;  %2210 = vmatprep.subr.bf16.mxu1 %v2398_v25 }
 0x307   :  { %1931 = vmatprep.mubr.bf16.mxu0 %v1386_v26  ;;  %2232 = vmatprep.subr.bf16.mxu0 %v2400_v60 }
 0x308   :  { %2211 = vmatpush3.bf16.msra.mxu1 %v2399_v27 }
 0x309   :  { %2212 = vmatprep.subr.bf16.mxu1 %v2402_v29 }
 0x30a   :  { %2233 = vmatpush3.bf16.msra.mxu0 %v2401_v30 }
 0x30b   :  { %2234 = vmatprep.subr.bf16.mxu0 %v2404_v14 }
 0x30c   :  { %2213 = vmatpush3.bf16.msra.mxu1 %v2403_v17 }
 0x30d   :  { %2214 = vmatprep.subr.bf16.mxu1 %v2406_v31 }
 0x30e   :  { %2235 = vmatpush3.bf16.msra.mxu0 %v2405_v32 }
 0x30f   :  { %2236 = vmatprep.subr.bf16.mxu0 %v2408_v37 }
 0x310   :  { %2215 = vmatpush3.bf16.msra.mxu1 %v2407_v48 }
 0x311   :  { %2216 = vmatprep.subr.bf16.mxu1 %v2410_v47 }
 0x312   :  { %2237 = vmatpush3.bf16.msra.mxu0 %v2409_v33 }
 0x313   :  { %2238 = vmatprep.subr.bf16.mxu0 %v2412_v59 }
 0x314   :  { %2217 = vmatpush3.bf16.msra.mxu1 %v2411_v61 }
 0x315   :  { %2218 = vmatprep.subr.bf16.mxu1 %v2414_v34 }
 0x316   :  { %2239 = vmatpush3.bf16.msra.mxu0 %v2413_v35 }
 0x317   :  { %2240 = vmatprep.subr.bf16.mxu0 %v2416_v36 }
 0x318   :  { %2219 = vmatpush3.bf16.msra.mxu1 %v2415_v38 }
 0x319   :  { %2220 = vmatprep.subr.bf16.mxu1 %v2418_v39 }
 0x31a   :  { %2241 = vmatpush3.bf16.msra.mxu0 %v2417_v41 }
 0x31b   :  { %2242 = vmatprep.subr.bf16.mxu0 %v2420_v3 }
 0x31c   :  { %2221 = vmatpush3.bf16.msra.mxu1 %v2419_v42 }
 0x31d   :  { %2222 = vmatprep.subr.bf16.mxu1 %v2422_v43 }
 0x31e   :  { %2243 = vmatpush3.bf16.msra.mxu0 %v2421_v40 }
 0x31f   :  { %2244 = vmatprep.subr.bf16.mxu0 %v2424_v44 }
 0x320   :  { %2223 = vmatpush3.bf16.msra.mxu1 %v2423_v49  ;;  %v2300_v54 = vpop.f32.mrf.mxu0 }
 0x322   :  { %2245 = vmatpush3.bf16.msra.mxu0 %v2425_v51  ;;  %v464_v55 = vpop.f32.mrf.mxu0 }
 0x323   :  { %1892 = vmatmul.mubr.bf16.vlgmr.msra.gmra.mxu1 %v1368_v52 }
 0x324   :  { %v2301_v56 = vpop.f32.mrf.mxu0 }
 0x325   :  { %1932 = vmatmul.mubr.bf16.vlgmr.msra.gmra.mxu0 %v1384_v53 }
 0x326   :  { %v466_v57 = vpop.f32.mrf.mxu0 }
 0x3c3   :  { %v2180_v21 = vpop.f32.mrf.mxu1 }
 0x3c5   :  { %v2181_v18 = vpop.f32.mrf.mxu1  ;;  %v2202_v50 = vpop.f32.mrf.mxu0 }
 0x3c6   :  { %v2182_v0 = vadd.f32 %v2181_v18, %v2180_v21 }
 0x3c7   :  { %v2183_v62 = vpop.f32.mrf.mxu1  ;;  %v2203_v63 = vpop.f32.mrf.mxu0 }
 0x3c8   :  { %v1814_v4 = vadd.f32 %v2182_v0, %v2040_v1  ;;  %v2204_v5 = vadd.f32 %v2203_v63, %v2202_v50 }
 0x3c9   :  { %v2184_v11 = vpop.f32.mrf.mxu1  ;;  %v2205_v28 = vpop.f32.mrf.mxu0 }
 0x3ca   :  { %v1854_v23 = vadd.f32 %v2204_v5, %v1814_v4 }
 0x3cb   :  { %v2206_v45 = vpop.f32.mrf.mxu0 }
 0x3e3   :  { %v2224_v6 = vpop.f32.mrf.mxu1 }
 0x3e5   :  { %v2225_v7 = vpop.f32.mrf.mxu1  ;;  %v2246_v16 = vpop.f32.mrf.mxu0 }
 0x3e6   :  { %v2226_v8 = vadd.f32 %v2225_v7, %v2224_v6 }
 0x3e7   :  { %v2227_v9 = vpop.f32.mrf.mxu1  ;;  %v2247_v10 = vpop.f32.mrf.mxu0 }
 0x3e8   :  { %v1894_v12 = vadd.f32 %v2226_v8, %v1854_v23  ;;  %v2248_v13 = vadd.f32 %v2247_v10, %v2246_v16 }
 0x3e9   :  { %v2228_v20 = vpop.f32.mrf.mxu1  ;;  %v2249_v15 = vpop.f32.mrf.mxu0 }
 0x3ea   :  { %v1934_v2 = vadd.f32 %v2248_v13, %v1894_v12 }
 0x3eb   :  { %v2250_v22 = vpop.f32.mrf.mxu0 }
 0x3ec   :  { %v1946_v24 = vmul.f32 %v2105_v19, %v1934_v2 }
 0x3ee   :  { %v1948_v25 = vsel %vm1947_vm9, %v1946_v24, 0.0 }
 0x3ef   :  { %1949 = vadd.xlane.f32.xlu0 %v1948_v25 }
 0x478   :  { %v1950_v60 = vpop.xlane.xlu0 %1949 }
 0x479   :  { %v1958_v26 = vadd.f32 %v2106_v58, %v1950_v60 }
 0x47b   :  { %v1959_v27 = vsub.f32 0.0, %v1958_v26 }
 0x47d   :  { %v1960_v29 = vmul.f32 1.442695, %v1959_v27 }
 0x47f   :  { %2426 = vpow2.f32 %v1960_v29 }
 0x48c   :  { %v2427_v30 = vpop.eup %2426 }
 0x48d   :  { %v1962_v14 = vadd.f32 1.0, %v2427_v30 }
 0x48f   :  { %2428 = vrcp.f32 %v1962_v14 }
 0x49c   :  { %v2429_v17 = vpop.eup %2428 }
 0x49d   :  { %1966 = vst.msk [vmem:[%s3137_s10] sm:$0x3] %vm1965_vm10, %v2429_v17 }

</bundles_post_ra>
